<compile_context>
chip_gen: v7x
topology: tpu7x:2x2x1
jax: 0.10.0
libtpu: 0.0.40
codegen_flags: <defaults>
</compile_context>

<pallas_src>
import jax
import jax.numpy as jnp
from jax.experimental import pallas as pl
from jax.experimental.pallas import tpu as pltpu


# Logical / lane-friendly padded dimensions.
K_IN = 784     # 28 * 28 (x stays unpadded; MXU/layout pad K internally)
N1_PAD = 384   # 300 -> 3 * 128
N2_PAD = 128   # 100 -> 128
N3_PAD = 128   # 10  -> 128 (lane-dense output; sliced back to 10 outside)


def lenet300100_kernel(x_ref, w1_ref, b1_ref, w2_ref, b2_ref, w3_ref, b3_ref,
                       out_ref):
    # x tile: (TB, 784) f32 -> cast to bf16 in-kernel (saves a wrapper pass).
    # MXU matmuls accumulate in f32; bias + ReLU run on the VPU in f32.
    x = x_ref[...].astype(jnp.bfloat16)
    h1 = jnp.dot(x, w1_ref[...], preferred_element_type=jnp.float32)
    h1 = jnp.maximum(h1 + b1_ref[...], 0.0)                       # (TB, 384)
    h2 = jnp.dot(h1.astype(jnp.bfloat16), w2_ref[...],
                 preferred_element_type=jnp.float32)
    h2 = jnp.maximum(h2 + b2_ref[...], 0.0)                       # (TB, 128)
    h3 = jnp.dot(h2.astype(jnp.bfloat16), w3_ref[...],
                 preferred_element_type=jnp.float32)
    out_ref[...] = h3 + b3_ref[...]                               # (TB, 128)


def _round_up(n, m):
    return (n + m - 1) // m * m


def _pad2d(a, rows, cols, dtype):
    r, c = a.shape
    return jnp.pad(a.astype(dtype), ((0, rows - r), (0, cols - c)))


def prepare_params(params):
    """One-time: pad to lane-friendly shapes and cast weights to bf16.

    Call once (e.g. at model load); pass the result to lenet300100_forward so
    the per-step cost is only the Pallas custom call.
    """
    return {
        "w1": _pad2d(params["w1"], K_IN, N1_PAD, jnp.bfloat16),
        "b1": _pad2d(params["b1"], 1, N1_PAD, jnp.float32),
        "w2": _pad2d(params["w2"], N1_PAD, N2_PAD, jnp.bfloat16),
        "b2": _pad2d(params["b2"], 1, N2_PAD, jnp.float32),
        "w3": _pad2d(params["w3"], N2_PAD, N3_PAD, jnp.bfloat16),
        "b3": _pad2d(params["b3"], 1, N3_PAD, jnp.float32),
    }


def lenet300100_forward(x_nchw, prepared, *, tb=1024):
    """x_nchw: (B, 1, 28, 28) float32. prepared: output of prepare_params()."""
    B = x_nchw.shape[0]
    x_flat = x_nchw.reshape(B, K_IN)                              # (B, 784) f32

    # Batch tile: multiple of 16 sublanes, capped at `tb`, and capped so big
    # batches produce >= 2 grid steps (keeps both TensorCores busy on v7x).
    tb_eff = min(_round_up(tb, 16), _round_up(B, 16))
    tb_eff = min(tb_eff, max(16, _round_up(pl.cdiv(B, 2), 16)))
    b_pad = _round_up(B, tb_eff)
    grid = (b_pad // tb_eff,)

    # Only the batch dim may need padding (zeros; padded rows sliced off).
    if b_pad != B:
        x_flat = jnp.pad(x_flat, ((0, b_pad - B), (0, 0)))

    def batch_spec(shape):
        return pl.BlockSpec(shape, lambda i: (i, 0))

    def const_spec(shape):
        # Same block every grid step -> stays resident in VMEM (no re-DMA).
        return pl.BlockSpec(shape, lambda i: (0, 0))

    w1p, b1p = prepared["w1"], prepared["b1"]
    w2p, b2p = prepared["w2"], prepared["b2"]
    w3p, b3p = prepared["w3"], prepared["b3"]

    flops = 2 * B * (784 * 300 + 300 * 100 + 100 * 10)
    bytes_accessed = (
        b_pad * K_IN * 4                                   # x read (f32)
        + (w1p.size + w2p.size + w3p.size) * 2             # bf16 weights, once
        + (b1p.size + b2p.size + b3p.size) * 4             # f32 biases, once
        + b_pad * N3_PAD * 4)                              # padded f32 output

    out_padded = pl.pallas_call(
        lenet300100_kernel,
        out_shape=jax.ShapeDtypeStruct((b_pad, N3_PAD), jnp.float32),
        grid=grid,
        in_specs=[
            batch_spec((tb_eff, K_IN)),
            const_spec(w1p.shape), const_spec(b1p.shape),
            const_spec(w2p.shape), const_spec(b2p.shape),
            const_spec(w3p.shape), const_spec(b3p.shape),
        ],
        out_specs=batch_spec((tb_eff, N3_PAD)),
        compiler_params=pltpu.CompilerParams(
            dimension_semantics=("parallel",),
            vmem_limit_bytes=32 * 1024 * 1024),
        cost_estimate=pl.CostEstimate(
            flops=flops, transcendentals=0, bytes_accessed=bytes_accessed),
    )(x_flat, w1p, b1p, w2p, b2p, w3p, b3p)

    return out_padded[:B, :10]


def init_params(key):
    """Deterministic synthetic params with LeNet-300-100 shapes, (in,out) layout."""
    k1, k2, k3, k4, k5, k6 = jax.random.split(key, 6)

    def u(k, shape, fan_in):
        bound = 1.0 / jnp.sqrt(fan_in)
        return jax.random.uniform(k, shape, jnp.float32, -bound, bound)

    return {
        "w1": u(k1, (784, 300), 784.0), "b1": u(k2, (1, 300), 784.0),
        "w2": u(k3, (300, 100), 300.0), "b2": u(k4, (1, 100), 300.0),
        "w3": u(k5, (100, 10), 100.0),  "b3": u(k6, (1, 10), 100.0),
    }


if __name__ == "__main__":
    key = jax.random.PRNGKey(0)
    pkey, xkey = jax.random.split(key)
    params = init_params(pkey)
    prepared = prepare_params(params)   # one-time pad/cast of weights

    B = 8
    x = jax.random.normal(xkey, (B, 1, 28, 28), dtype=jnp.float32)

    out = lenet300100_forward(x, prepared)
    out = jax.block_until_ready(out)
    assert out.shape == (B, 10)

    # Reference mirroring the kernel's precision policy (bf16 operands,
    # f32 accumulation, f32 bias/ReLU).
    xf = x.reshape(B, -1).astype(jnp.bfloat16)
    w1b = params["w1"].astype(jnp.bfloat16)
    w2b = params["w2"].astype(jnp.bfloat16)
    w3b = params["w3"].astype(jnp.bfloat16)
    h1 = jnp.maximum(
        jnp.dot(xf, w1b, preferred_element_type=jnp.float32) + params["b1"], 0.0)
    h2 = jnp.maximum(
        jnp.dot(h1.astype(jnp.bfloat16), w2b,
                preferred_element_type=jnp.float32) + params["b2"], 0.0)
    ref = (jnp.dot(h2.astype(jnp.bfloat16), w3b,
                   preferred_element_type=jnp.float32) + params["b3"])
    assert jnp.allclose(out, ref, atol=1e-2, rtol=1e-2), (
        float(jnp.max(jnp.abs(out - ref))))

    print("KERNEL_OK")
</pallas_src>

<mosaic_0001>
module attributes {stable_mosaic.version = 11 : i64} {
  func.func @lenet300100_kernel(%arg0: i32, %arg1: memref<16x784xf32, #tpu.memory_space<vmem>>, %arg2: memref<784x384xbf16, #tpu.memory_space<vmem>>, %arg3: memref<1x384xf32, #tpu.memory_space<vmem>>, %arg4: memref<384x128xbf16, #tpu.memory_space<vmem>>, %arg5: memref<1x128xf32, #tpu.memory_space<vmem>>, %arg6: memref<128x128xbf16, #tpu.memory_space<vmem>>, %arg7: memref<1x128xf32, #tpu.memory_space<vmem>>, %arg8: memref<16x128xf32, #tpu.memory_space<vmem>>) attributes {dimension_semantics = [#tpu.dimension_semantics<parallel>], iteration_bounds = array<i64: 1>, scalar_prefetch = 0 : i64, scratch_operands = 0 : i64, tpu.core_type = #tpu.core_type<tc>, window_params = [{transform_indices = @transform_0, window_bounds = array<i64: 16, 784>}, {pipeline_mode = #tpu.pipeline_mode<synchronous>, transform_indices = @transform_1, window_bounds = array<i64: 784, 384>}, {pipeline_mode = #tpu.pipeline_mode<synchronous>, transform_indices = @transform_2, window_bounds = array<i64: 1, 384>}, {pipeline_mode = #tpu.pipeline_mode<synchronous>, transform_indices = @transform_3, window_bounds = array<i64: 384, 128>}, {pipeline_mode = #tpu.pipeline_mode<synchronous>, transform_indices = @transform_4, window_bounds = array<i64: 1, 128>}, {pipeline_mode = #tpu.pipeline_mode<synchronous>, transform_indices = @transform_5, window_bounds = array<i64: 128, 128>}, {pipeline_mode = #tpu.pipeline_mode<synchronous>, transform_indices = @transform_6, window_bounds = array<i64: 1, 128>}, {transform_indices = @transform_7, window_bounds = array<i64: 16, 128>}]} {
    %c0 = arith.constant 0 : index
    %c0_0 = arith.constant 0 : index
    %0 = vector.load %arg1[%c0, %c0_0] : memref<16x784xf32, #tpu.memory_space<vmem>>, vector<16x784xf32>
    %1 = arith.truncf %0 : vector<16x784xf32> to vector<16x784xbf16>
    %c0_1 = arith.constant 0 : index
    %c0_2 = arith.constant 0 : index
    %2 = vector.load %arg2[%c0_1, %c0_2] : memref<784x384xbf16, #tpu.memory_space<vmem>>, vector<784x384xbf16>
    %cst = arith.constant dense<0.000000e+00> : vector<16x384xf32>
    %3 = tpu.matmul %1, %2, %cst {dimension_numbers = #tpu.dot_dimension_numbers<[1], [0], [0], [1], [0, 0, 1, 1], [], []>} : vector<16x784xbf16>, vector<784x384xbf16>, vector<16x384xf32> -> vector<16x384xf32>
    %c0_3 = arith.constant 0 : index
    %c0_4 = arith.constant 0 : index
    %4 = vector.load %arg3[%c0_3, %c0_4] : memref<1x384xf32, #tpu.memory_space<vmem>>, vector<1x384xf32>
    %5 = vector.broadcast %4 : vector<1x384xf32> to vector<16x384xf32>
    %6 = arith.addf %3, %5 : vector<16x384xf32>
    %cst_5 = arith.constant 0.000000e+00 : f32
    %7 = vector.broadcast %cst_5 : f32 to vector<16x384xf32>
    %8 = arith.maximumf %6, %7 : vector<16x384xf32>
    %9 = arith.truncf %8 : vector<16x384xf32> to vector<16x384xbf16>
    %c0_6 = arith.constant 0 : index
    %c0_7 = arith.constant 0 : index
    %10 = vector.load %arg4[%c0_6, %c0_7] : memref<384x128xbf16, #tpu.memory_space<vmem>>, vector<384x128xbf16>
    %cst_8 = arith.constant dense<0.000000e+00> : vector<16x128xf32>
    %11 = tpu.matmul %9, %10, %cst_8 {dimension_numbers = #tpu.dot_dimension_numbers<[1], [0], [0], [1], [0, 0, 1, 1], [], []>} : vector<16x384xbf16>, vector<384x128xbf16>, vector<16x128xf32> -> vector<16x128xf32>
    %c0_9 = arith.constant 0 : index
    %c0_10 = arith.constant 0 : index
    %12 = vector.load %arg5[%c0_9, %c0_10] : memref<1x128xf32, #tpu.memory_space<vmem>>, vector<1x128xf32>
    %13 = vector.broadcast %12 : vector<1x128xf32> to vector<16x128xf32>
    %14 = arith.addf %11, %13 : vector<16x128xf32>
    %cst_11 = arith.constant 0.000000e+00 : f32
    %15 = vector.broadcast %cst_11 : f32 to vector<16x128xf32>
    %16 = arith.maximumf %14, %15 : vector<16x128xf32>
    %17 = arith.truncf %16 : vector<16x128xf32> to vector<16x128xbf16>
    %c0_12 = arith.constant 0 : index
    %c0_13 = arith.constant 0 : index
    %18 = vector.load %arg6[%c0_12, %c0_13] : memref<128x128xbf16, #tpu.memory_space<vmem>>, vector<128x128xbf16>
    %cst_14 = arith.constant dense<0.000000e+00> : vector<16x128xf32>
    %19 = tpu.matmul %17, %18, %cst_14 {dimension_numbers = #tpu.dot_dimension_numbers<[1], [0], [0], [1], [0, 0, 1, 1], [], []>} : vector<16x128xbf16>, vector<128x128xbf16>, vector<16x128xf32> -> vector<16x128xf32>
    %c0_15 = arith.constant 0 : index
    %c0_16 = arith.constant 0 : index
    %20 = vector.load %arg7[%c0_15, %c0_16] : memref<1x128xf32, #tpu.memory_space<vmem>>, vector<1x128xf32>
    %21 = vector.broadcast %20 : vector<1x128xf32> to vector<16x128xf32>
    %22 = arith.addf %19, %21 : vector<16x128xf32>
    %c0_17 = arith.constant 0 : index
    %c0_18 = arith.constant 0 : index
    %23 = vector.load %arg8[%c0_17, %c0_18] : memref<16x128xf32, #tpu.memory_space<vmem>>, vector<16x128xf32>
    tpu.vector_store %arg8[%c0_17, %c0_18], %22 {strides = array<i32>} : memref<16x128xf32, #tpu.memory_space<vmem>>, vector<16x128xf32>,
    return
  }
  func.func @transform_0(%arg0: i32) -> (i32, i32) {
    %c0_i32 = arith.constant 0 : i32
    %c0_i32_0 = arith.constant 0 : i32
    return %arg0, %c0_i32 : i32, i32
  }
  func.func @transform_1(%arg0: i32) -> (i32, i32) {
    %c0_i32 = arith.constant 0 : i32
    %c0_i32_0 = arith.constant 0 : i32
    %c0_i32_1 = arith.constant 0 : i32
    return %c0_i32, %c0_i32_0 : i32, i32
  }
  func.func @transform_2(%arg0: i32) -> (i32, i32) {
    %c0_i32 = arith.constant 0 : i32
    %c0_i32_0 = arith.constant 0 : i32
    %c0_i32_1 = arith.constant 0 : i32
    return %c0_i32, %c0_i32_0 : i32, i32
  }
  func.func @transform_3(%arg0: i32) -> (i32, i32) {
    %c0_i32 = arith.constant 0 : i32
    %c0_i32_0 = arith.constant 0 : i32
    %c0_i32_1 = arith.constant 0 : i32
    return %c0_i32, %c0_i32_0 : i32, i32
  }
  func.func @transform_4(%arg0: i32) -> (i32, i32) {
    %c0_i32 = arith.constant 0 : i32
    %c0_i32_0 = arith.constant 0 : i32
    %c0_i32_1 = arith.constant 0 : i32
    return %c0_i32, %c0_i32_0 : i32, i32
  }
  func.func @transform_5(%arg0: i32) -> (i32, i32) {
    %c0_i32 = arith.constant 0 : i32
    %c0_i32_0 = arith.constant 0 : i32
    %c0_i32_1 = arith.constant 0 : i32
    return %c0_i32, %c0_i32_0 : i32, i32
  }
  func.func @transform_6(%arg0: i32) -> (i32, i32) {
    %c0_i32 = arith.constant 0 : i32
    %c0_i32_0 = arith.constant 0 : i32
    %c0_i32_1 = arith.constant 0 : i32
    return %c0_i32, %c0_i32_0 : i32, i32
  }
  func.func @transform_7(%arg0: i32) -> (i32, i32) {
    %c0_i32 = arith.constant 0 : i32
    %c0_i32_0 = arith.constant 0 : i32
    return %arg0, %c0_i32 : i32, i32
  }
}

</mosaic_0001>

<bundles_post_ra>
// kernel: tpu_custom_call.1
= control target key start
LH: loop header
LB: loop body
LE: loop exit
PB: predicated region body
PF: predicated region fallthrough
CT: control target
= control target key end

     0   :  { %12 = vsyncpa [#allocation3], 0  ;;  %s2744_s0 = inlined_call_operand.hbm [shape: f32[16,784], index: 0, kind: input, shape index: {}]   ;;  %s2745_s1 = inlined_call_operand.hbm [shape: bf16[784,384], index: 1, kind: input, shape index: {}]   ;;  %s2746_s2 = inlined_call_operand.vmem [shape: f32[1,384], index: 2, kind: input, shape index: {}]   ;;  %s2747_s3 = inlined_call_operand.hbm [shape: bf16[384,128], index: 3, kind: input, shape index: {}]   ;;  %s2748_s4 = inlined_call_operand.vmem [shape: f32[1,128], index: 4, kind: input, shape index: {}]   ;;  %s2749_s5 = inlined_call_operand.hbm [shape: bf16[128,128], index: 5, kind: input, shape index: {}]   ;;  %s2750_s6 = inlined_call_operand.vmem [shape: f32[1,128], index: 6, kind: input, shape index: {}]   ;;  %s2751_s7 = inlined_call_operand.hbm [shape: f32[16,128], index: 7, kind: output, shape index: {}]  }
   0x1   :  { %13 = vsyncpa [#allocation6], 0 }
   0x2   :  { %14 = vsyncpa [#allocation9], 0 }
   0x3   :  { %15 = vsyncpa [#allocation4], 0  ;;  %s2582_s24 = smov [#allocation5]   ;;  %s2464_s28 = scalar_lea.hbm %s2745_s1, 18816 }
   0x4   :  { %s33_s25 = sshll.u32 %s2582_s24, 4  ;;  %p2465_p0 = scmp.ne.s32.totalorder %s2745_s1, %s2464_s28  ;;  %s34_s25 = int_to_ptr.vmem [resolvable:$true] %s33_s25 }
   0x5   :  { %p2468_p1 = scmp.lt.u32.totalorder %s2464_s28, %s2745_s1 }
   0x7   :  { %p2470_p2 = pnand %p2468_p1, %p2465_p0 }
   0x9   :  { %2473 = shalt.err (!%p2470_p2)
}
   0xa   :  { %s2474_s10 = scalar_lea.vmem %s34_s25, 18816  ;;  %p2479_p4 = scmp.lt.s32.totalorder %s34_s25, %s34_s25 }
   0xb   :  { %p2475_p3 = scmp.ne.s32.totalorder %s34_s25, %s2474_s10  ;;  %p2480_p5 = scmp.lt.s32.totalorder %s2474_s10, %s2474_s10 }
   0xd   :  { %p2481_p6 = por %p2480_p5, %p2479_p4 }
   0xf   :  { %p2482_p7 = pnand %p2481_p6, %p2475_p3 }
  0x11   :  { %2485 = shalt.err (!%p2482_p7)
}
  0x12   :  { %s2583_s11 = smov 192   ;;  %s2584_s12 = smov 12  }
  0x13   :  { %39 = dma.hbm_to_vmem [thread:$0]  %s2745_s1, 18816, %s34_s25, [#allocation6], %s2583_s11, %s2583_s11, %s2584_s12  }
  0x14   :  { %s2585_s15 = smov [#allocation2]   ;;  %s2486_s19 = scalar_lea.hbm %s2744_s0, 1792 }
  0x15   :  { %s21_s16 = sshll.u32 %s2585_s15, 4  ;;  %p2487_p8 = scmp.ne.s32.totalorder %s2744_s0, %s2486_s19  ;;  %s22_s16 = int_to_ptr.vmem [resolvable:$true] %s21_s16 }
  0x16   :  { %p2490_p9 = scmp.lt.u32.totalorder %s2486_s19, %s2744_s0 }
  0x18   :  { %p2492_p10 = pnand %p2490_p9, %p2487_p8 }
  0x1a   :  { %2495 = shalt.err (!%p2492_p10)
}
  0x1b   :  { %s2496_s24 = scalar_lea.vmem %s22_s16, 1792  ;;  %p2501_p12 = scmp.lt.s32.totalorder %s22_s16, %s22_s16 }
  0x1c   :  { %p2497_p11 = scmp.ne.s32.totalorder %s22_s16, %s2496_s24  ;;  %p2502_p13 = scmp.lt.s32.totalorder %s2496_s24, %s2496_s24 }
  0x1e   :  { %p2503_p0 = por %p2502_p13, %p2501_p12 }
  0x20   :  { %p2504_p1 = pnand %p2503_p0, %p2497_p11 }
  0x22   :  { %2507 = shalt.err (!%p2504_p1)
}
  0x23   :  { %s2586_s1 = smov 896   ;;  %s2587_s25 = smov 56  }
  0x24   :  { %27 = dma.hbm_to_vmem [thread:$0]  %s2744_s0, 1792, %s22_s16, [#allocation3], %s2586_s1, %s2586_s1, %s2587_s25  }
  0x25   :  { %s2588_s28 = smov [#allocation7]   ;;  %s2508_s9 = scalar_lea.hbm %s2747_s3, 3072 }
  0x26   :  { %s47_s29 = sshll.u32 %s2588_s28, 4  ;;  %p2509_p2 = scmp.ne.s32.totalorder %s2747_s3, %s2508_s9  ;;  %s48_s29 = int_to_ptr.vmem [resolvable:$true] %s47_s29 }
  0x27   :  { %p2512_p3 = scmp.lt.u32.totalorder %s2508_s9, %s2747_s3 }
  0x29   :  { %p2514_p4 = pnand %p2512_p3, %p2509_p2 }
  0x2b   :  { %2517 = shalt.err (!%p2514_p4)
}
  0x2c   :  { %s2518_s14 = scalar_lea.vmem %s48_s29, 3072  ;;  %p2523_p6 = scmp.lt.s32.totalorder %s48_s29, %s48_s29 }
  0x2d   :  { %p2519_p5 = scmp.ne.s32.totalorder %s48_s29, %s2518_s14  ;;  %p2524_p7 = scmp.lt.s32.totalorder %s2518_s14, %s2518_s14 }
  0x2f   :  { %p2525_p8 = por %p2524_p7, %p2523_p6 }
  0x31   :  { %p2526_p9 = pnand %p2525_p8, %p2519_p5 }
  0x33   :  { %2529 = shalt.err (!%p2526_p9)
}
  0x34   :  { %s2589_s0 = smov 64   ;;  %s2590_s15 = smov 4  }
  0x35   :  { %53 = dma.hbm_to_vmem [thread:$0]  %s2747_s3, 3072, %s48_s29, [#allocation6], %s2589_s0, %s2589_s0, %s2590_s15  }
  0x36   :  { %s2591_s18 = smov [#allocation8]   ;;  %s2530_s22 = scalar_lea.hbm %s2749_s5, 1024 }
  0x37   :  { %s61_s19 = sshll.u32 %s2591_s18, 4  ;;  %p2531_p10 = scmp.ne.s32.totalorder %s2749_s5, %s2530_s22  ;;  %s62_s19 = int_to_ptr.vmem [resolvable:$true] %s61_s19 }
  0x38   :  { %p2534_p11 = scmp.lt.u32.totalorder %s2530_s22, %s2749_s5 }
  0x3a   :  { %p2536_p12 = pnand %p2534_p11, %p2531_p10 }
  0x3c   :  { %2539 = shalt.err (!%p2536_p12)
}
  0x3d   :  { %s2540_s26 = scalar_lea.vmem %s62_s19, 1024  ;;  %p2545_p0 = scmp.lt.s32.totalorder %s62_s19, %s62_s19 }
  0x3e   :  { %p2541_p13 = scmp.ne.s32.totalorder %s62_s19, %s2540_s26  ;;  %p2546_p1 = scmp.lt.s32.totalorder %s2540_s26, %s2540_s26 }
  0x40   :  { %p2547_p2 = por %p2546_p1, %p2545_p0 }
  0x42   :  { %p2548_p3 = pnand %p2547_p2, %p2541_p13 }
  0x44   :  { %2551 = shalt.err (!%p2548_p3)
}
  0x45   :  { %67 = dma.hbm_to_vmem [thread:$0]  %s2749_s5, 1024, %s62_s19, [#allocation9], %s2589_s0, %s2589_s0, %s2590_s15  }
  0x46   :  { %2574 = dma.done.wait [#allocation3], 1792  }
  0x47   :  { %2575 = vsyncadd [#allocation3], 4294965504 }
  0x48   :  { %2576 = dma.done.wait [#allocation6], 21888  }
  0x49   :  { %2577 = vsyncadd [#allocation6], 4294945408 }
  0x4a   :  { %2578 = dma.done.wait [#allocation9], 1024  }
  0x4b   :  { %2579 = vsyncadd [#allocation9], 4294966272  ;;  %v2236_v0 = vld [vmem:[#allocation5 + $0x4] ss:$12 sps:$4 sm:$0xff]   ;;  %v2238_v1 = vld [vmem:[#allocation5] ss:$12 sps:$4 sm:$0xff]  }
  0x4c   :  { %1105 = vmatprep.subr.bf16.mxu0 %v2236_v0  ;;  %v2239_v2 = vld [vmem:[#allocation5 + $0x1c] ss:$12 sps:$4 sm:$0xff]   ;;  %v2241_v3 = vld [vmem:[#allocation5 + $0x18] ss:$12 sps:$4 sm:$0xff]   ;;  %v2242_v4 = vld [vmem:[#allocation5 + $0x34] ss:$12 sps:$4 sm:$0xff]  }
  0x4d   :  { %1106 = vmatpush1.bf16.msra.mxu0 %v2238_v1  ;;  %v2244_v5 = vld [vmem:[#allocation5 + $0x30] ss:$12 sps:$4 sm:$0xff]   ;;  %v2245_v6 = vld [vmem:[#allocation5 + $0x4c] ss:$12 sps:$4 sm:$0xff]   ;;  %v2247_v7 = vld [vmem:[#allocation5 + $0x48] ss:$12 sps:$4 sm:$0xff]  }
  0x4e   :  { %1107 = vmatprep.subr.bf16.mxu0 %v2239_v2  ;;  %v2248_v8 = vld [vmem:[#allocation5 + $0x64] ss:$12 sps:$4 sm:$0xff]   ;;  %v2250_v9 = vld [vmem:[#allocation5 + $0x60] ss:$12 sps:$4 sm:$0xff]   ;;  %v2251_v10 = vld [vmem:[#allocation5 + $0x7c] ss:$12 sps:$4 sm:$0xff]  }
  0x4f   :  { %v2253_v11 = vld [vmem:[#allocation5 + $0x78] ss:$12 sps:$4 sm:$0xff]   ;;  %v2254_v12 = vld [vmem:[#allocation5 + $0x94] ss:$12 sps:$4 sm:$0xff]   ;;  %v2256_v16 = vld [vmem:[#allocation5 + $0x90] ss:$12 sps:$4 sm:$0xff]  }
  0x50   :  { %v84_v13 = vld [vmem:[#allocation2 + $0x8] sm:$0xff]  ;;  %v91_v14 = vld [vmem:[#allocation2 + $0x40] sm:$0xff]  ;;  %v2295_v22 = vld [vmem:[#allocation5 + $0xe0] ss:$12 sps:$4 sm:$0xff]   ;;  %vm1101_vm0 = vcmask 130048   ;;  %vm2593_vm1 = vmmov 0  }
  0x51   :  { %1108 = vmatpush1.bf16.msra.mxu0 %v2241_v3  ;;  %v98_v15 = vpack.c.bf16 %v91_v14, %v84_v13  ;;  %v2257_v17 = vld [vmem:[#allocation5 + $0xac] ss:$12 sps:$4 sm:$0xff]   ;;  %v2259_v18 = vld [vmem:[#allocation5 + $0xa8] ss:$12 sps:$4 sm:$0xff]   ;;  %v2260_v21 = vld [vmem:[#allocation5 + $0xc4] ss:$12 sps:$4 sm:$0xff]  }
  0x52   :  { %1109 = vmatprep.subr.bf16.mxu0 %v2242_v4  ;;  %v2290_v19 = vld [vmem:[#allocation5 + $0xc8] ss:$12 sps:$4 sm:$0xff]   ;;  %v2296_v23 = vld [vmem:[#allocation5 + $0x20] ss:$12 sps:$4 sm:$0xff]   ;;  %v2300_v26 = vld [vmem:[#allocation5 + $0xf8] ss:$12 sps:$4 sm:$0xff]  }
  0x53   :  { %1137 = vmatprep.mubr.bf16.mxu0 %v98_v15  ;;  %1309 = vmatprep.mubr.bf16.mxu1 %v98_v15  ;;  %v2291_v20 = vld [vmem:[#allocation5 + $0x8] ss:$12 sps:$4 sm:$0xff]   ;;  %v2262_v24 = vld [vmem:[#allocation5 + $0xc0] ss:$12 sps:$4 sm:$0xff]   ;;  %v2301_v27 = vld [vmem:[#allocation5 + $0x38] ss:$12 sps:$4 sm:$0xff]  }
  0x54   :  { %2050 = vmatprep.subr.bf16.mxu1 %v2290_v19  ;;  %v2263_v25 = vld [vmem:[#allocation5 + $0xdc] ss:$12 sps:$4 sm:$0xff]   ;;  %v2265_v28 = vld [vmem:[#allocation5 + $0xd8] ss:$12 sps:$4 sm:$0xff]   ;;  %v2266_v29 = vld [vmem:[#allocation5 + $0xf4] ss:$12 sps:$4 sm:$0xff]  }
  0x55   :  { %1110 = vmatpush1.bf16.msra.mxu0 %v2244_v5  ;;  %2051 = vmatpush3.bf16.msra.mxu1 %v2291_v20  ;;  %v2305_v30 = vld [vmem:[#allocation5 + $0x110] ss:$12 sps:$4 sm:$0xff]   ;;  %v2310_v33 = vld [vmem:[#allocation5 + $0x128] ss:$12 sps:$4 sm:$0xff]   ;;  %v2269_v34 = vld [vmem:[#allocation5 + $0x10c] ss:$12 sps:$4 sm:$0xff]  }
  0x56   :  { %1111 = vmatprep.subr.bf16.mxu0 %v2245_v6  ;;  %2052 = vmatprep.subr.bf16.mxu1 %v2295_v22  ;;  %v2306_v31 = vld [vmem:[#allocation5 + $0x50] ss:$12 sps:$4 sm:$0xff]   ;;  %v2311_v35 = vld [vmem:[#allocation5 + $0x68] ss:$12 sps:$4 sm:$0xff]   ;;  %v2315_v36 = vld [vmem:[#allocation5 + $0x140] ss:$12 sps:$4 sm:$0xff]  }
  0x57   :  { %v2268_v32 = vld [vmem:[#allocation5 + $0xf0] ss:$12 sps:$4 sm:$0xff]   ;;  %v2271_v37 = vld [vmem:[#allocation5 + $0x108] ss:$12 sps:$4 sm:$0xff]   ;;  %v2316_v39 = vld [vmem:[#allocation5 + $0x80] ss:$12 sps:$4 sm:$0xff]  }
  0x58   :  { %v2272_v38 = vld [vmem:[#allocation5 + $0x124] ss:$12 sps:$4 sm:$0xff]   ;;  %v2274_v41 = vld [vmem:[#allocation5 + $0x120] ss:$12 sps:$4 sm:$0xff]   ;;  %v2275_v42 = vld [vmem:[#allocation5 + $0x13c] ss:$12 sps:$4 sm:$0xff]  }
  0x59   :  { %1112 = vmatpush1.bf16.msra.mxu0 %v2247_v7  ;;  %2053 = vmatpush3.bf16.msra.mxu1 %v2296_v23  ;;  %v2320_v40 = vld [vmem:[#allocation5 + $0x158] ss:$12 sps:$4 sm:$0xff]   ;;  %v2325_v44 = vld [vmem:[#allocation5 + $0x170] ss:$12 sps:$4 sm:$0xff]   ;;  %v2278_v46 = vld [vmem:[#allocation5 + $0x154] ss:$12 sps:$4 sm:$0xff]  }
  0x5a   :  { %1113 = vmatprep.subr.bf16.mxu0 %v2248_v8  ;;  %2054 = vmatprep.subr.bf16.mxu1 %v2300_v26  ;;  %v2321_v43 = vld [vmem:[#allocation5 + $0x98] ss:$12 sps:$4 sm:$0xff]   ;;  %v2280_v47 = vld [vmem:[#allocation5 + $0x150] ss:$12 sps:$4 sm:$0xff]   ;;  %v2330_v50 = vld [vmem:[#allocation5 + $0x248] ss:$12 sps:$4 sm:$0xff]  }
  0x5b   :  { %v2277_v45 = vld [vmem:[#allocation5 + $0x138] ss:$12 sps:$4 sm:$0xff]   ;;  %v83_v48 = vld [vmem:[#allocation2] sm:$0xff]  ;;  %v90_v51 = vld [vmem:[#allocation2 + $0x38] sm:$0xff]  ;;  %s2595_s9 = smov [#allocation10]  }
  0x5c   :  { %v2326_v49 = vld [vmem:[#allocation5 + $0xb0] ss:$12 sps:$4 sm:$0xff]   ;;  %v2281_v52 = vld [vmem:[#allocation5 + $0x16c] ss:$12 sps:$4 sm:$0xff]   ;;  %v2331_v53 = vld [vmem:[#allocation5 + $0x188] ss:$12 sps:$4 sm:$0xff]   ;;  %v97_v54 = vpack.c.bf16 %v90_v51, %v83_v48 }
  0x5d   :  { %1114 = vmatpush1.bf16.msra.mxu0 %v2250_v9  ;;  %2055 = vmatpush3.bf16.msra.mxu1 %v2301_v27  ;;  %v2335_v55 = vld [vmem:[#allocation5 + $0x260] ss:$12 sps:$4 sm:$0xff]   ;;  %v2283_v56 = vld [vmem:[#allocation5 + $0x168] ss:$12 sps:$4 sm:$0xff]   ;;  %v2286_v57 = vld [vmem:[#allocation5 + $0x184] ss:$12 sps:$4 sm:$0xff]  }
  0x5e   :  { %1115 = vmatprep.subr.bf16.mxu0 %v2251_v10  ;;  %2056 = vmatprep.subr.bf16.mxu1 %v2305_v30  ;;  %v2336_v58 = vld [vmem:[#allocation5 + $0x1a0] ss:$12 sps:$4 sm:$0xff]   ;;  %v2340_v59 = vld [vmem:[#allocation5 + $0x278] ss:$12 sps:$4 sm:$0xff]   ;;  %v2289_v61 = vld [vmem:[#allocation5 + $0x19c] ss:$12 sps:$4 sm:$0xff]  }
  0x5f   :  { %v2284_v60 = vld [vmem:[#allocation5 + $0x180] ss:$12 sps:$4 sm:$0xff]   ;;  %v2341_v62 = vld [vmem:[#allocation5 + $0x1b8] ss:$12 sps:$4 sm:$0xff]   ;;  %v2345_v63 = vld [vmem:[#allocation5 + $0x290] ss:$12 sps:$4 sm:$0xff]  }
  0x60   :  { %v2287_v0 = vld [vmem:[#allocation5 + $0x198] ss:$12 sps:$4 sm:$0xff]   ;;  %v2294_v1 = vld [vmem:[#allocation5 + $0x1b4] ss:$12 sps:$4 sm:$0xff]   ;;  %v2346_v2 = vld [vmem:[#allocation5 + $0x1d0] ss:$12 sps:$4 sm:$0xff]  }
  0x61   :  { %1116 = vmatpush1.bf16.msra.mxu0 %v2253_v11  ;;  %2057 = vmatpush3.bf16.msra.mxu1 %v2306_v31  ;;  %v2350_v3 = vld [vmem:[#allocation5 + $0x2a8] ss:$12 sps:$4 sm:$0xff]   ;;  %v2292_v4 = vld [vmem:[#allocation5 + $0x1b0] ss:$12 sps:$4 sm:$0xff]   ;;  %v2299_v5 = vld [vmem:[#allocation5 + $0x1cc] ss:$12 sps:$4 sm:$0xff]  }
  0x62   :  { %1117 = vmatprep.subr.bf16.mxu0 %v2254_v12  ;;  %2058 = vmatprep.subr.bf16.mxu1 %v2310_v33  ;;  %v2351_v6 = vld [vmem:[#allocation5 + $0x1e8] ss:$12 sps:$4 sm:$0xff]   ;;  %v2355_v7 = vld [vmem:[#allocation5 + $0x2c0] ss:$12 sps:$4 sm:$0xff]   ;;  %v2304_v12 = vld [vmem:[#allocation5 + $0x1e4] ss:$12 sps:$4 sm:$0xff]  }
  0x63   :  { %v86_v8 = vld [vmem:[#allocation2 + $0x18] sm:$0xff]  ;;  %v93_v9 = vld [vmem:[#allocation2 + $0x50] sm:$0xff]  ;;  %v2366_v22 = vld [vmem:[#allocation5 + $0x230] ss:$12 sps:$4 sm:$0xff]   ;;  %s1853_s10 = sshll.u32 %s2595_s9, 4  ;;  %s1854_s10 = int_to_ptr.vmem [resolvable:$true] %s1853_s10 }
  0x64   :  { %v2297_v10 = vld [vmem:[#allocation5 + $0x1c8] ss:$12 sps:$4 sm:$0xff]   ;;  %v100_v11 = vpack.c.bf16 %v93_v9, %v86_v8  ;;  %v2356_v13 = vld [vmem:[#allocation5 + $0x200] ss:$12 sps:$4 sm:$0xff]   ;;  %v2360_v14 = vld [vmem:[#allocation5 + $0x2d8] ss:$12 sps:$4 sm:$0xff]   ;;  %p2557_p5 = scmp.lt.s32.totalorder %s1854_s10, %s1854_s10 }
  0x65   :  { %1118 = vmatpush1.bf16.msra.mxu0 %v2256_v16  ;;  %2059 = vmatpush3.bf16.msra.mxu1 %v2311_v35  ;;  %v2302_v15 = vld [vmem:[#allocation5 + $0x1e0] ss:$12 sps:$4 sm:$0xff]   ;;  %v2309_v16 = vld [vmem:[#allocation5 + $0x1fc] ss:$12 sps:$4 sm:$0xff]   ;;  %v2307_v19 = vld [vmem:[#allocation5 + $0x1f8] ss:$12 sps:$4 sm:$0xff]  }
  0x66   :  { %1119 = vmatprep.subr.bf16.mxu0 %v2257_v17  ;;  %2060 = vmatprep.subr.bf16.mxu1 %v2315_v36  ;;  %v2361_v17 = vld [vmem:[#allocation5 + $0x218] ss:$12 sps:$4 sm:$0xff]   ;;  %v2314_v20 = vld [vmem:[#allocation5 + $0x214] ss:$12 sps:$4 sm:$0xff]   ;;  %v2329_v35 = vld [vmem:[#allocation5 + $0x25c] ss:$12 sps:$4 sm:$0xff]  }
  0x67   :  { %v85_v23 = vld [vmem:[#allocation2 + $0x10] sm:$0xff]  ;;  %v2319_v26 = vld [vmem:[#allocation5 + $0x22c] ss:$12 sps:$4 sm:$0xff]   ;;  %v2371_v27 = vld [vmem:[#allocation5 + $0x308] ss:$12 sps:$4 sm:$0xff]  }
  0x68   :  { %v2317_v30 = vld [vmem:[#allocation5 + $0x228] ss:$12 sps:$4 sm:$0xff]   ;;  %v2324_v31 = vld [vmem:[#allocation5 + $0x244] ss:$12 sps:$4 sm:$0xff]   ;;  %v2396_v51 = vld [vmem:[#allocation5 + $0x380] ss:$12 sps:$4 sm:$0xff]  }
  0x69   :  { %1120 = vmatpush1.bf16.msra.mxu0 %v2259_v18  ;;  %2061 = vmatpush3.bf16.msra.mxu1 %v2316_v39  ;;  %v2365_v18 = vld [vmem:[#allocation5 + $0x2f0] ss:$12 sps:$4 sm:$0xff]   ;;  %v2380_v33 = vld [vmem:[#allocation5 + $0x3f8] ss:$12 sps:$4 sm:$0xff]   ;;  %v2334_v39 = vld [vmem:[#allocation5 + $0x274] ss:$12 sps:$4 sm:$0xff]  }
  0x6a   :  { %1121 = vmatprep.subr.bf16.mxu0 %v2260_v21  ;;  %2062 = vmatprep.subr.bf16.mxu1 %v2320_v40  ;;  %v2312_v21 = vld [vmem:[#allocation5 + $0x210] ss:$12 sps:$4 sm:$0xff]   ;;  %v2381_v36 = vld [vmem:[#allocation5 + $0x338] ss:$12 sps:$4 sm:$0xff]  }
  0x6b   :  { %v2386_v40 = vld [vmem:[#allocation5 + $0x350] ss:$12 sps:$4 sm:$0xff]  }
  0x6c   :  { %v2369_v8 = vld [vmem:[#allocation5 + $0x31c] ss:$12 sps:$4 sm:$0xff]  }
  0x6d   :  { %1122 = vmatpush1.bf16.msra.mxu0 %v2262_v24  ;;  %2063 = vmatpush3.bf16.msra.mxu1 %v2321_v43  ;;  %v2370_v24 = vld [vmem:[#allocation5 + $0x3c8] ss:$12 sps:$4 sm:$0xff]   ;;  %v2339_v43 = vld [vmem:[#allocation5 + $0x28c] ss:$12 sps:$4 sm:$0xff]  }
  0x6e   :  { %1123 = vmatprep.subr.bf16.mxu0 %v2263_v25  ;;  %2064 = vmatprep.subr.bf16.mxu1 %v2325_v44  ;;  %v92_v25 = vld [vmem:[#allocation2 + $0x48] sm:$0xff]  ;;  %v2391_v44 = vld [vmem:[#allocation5 + $0x368] ss:$12 sps:$4 sm:$0xff]  }
  0x71   :  { %1124 = vmatpush1.bf16.msra.mxu0 %v2265_v28  ;;  %2065 = vmatpush3.bf16.msra.mxu1 %v2326_v49  ;;  %v2686_v28 = vpack.c.bf16 %v92_v25, %v85_v23  ;;  %v2337_v49 = vld [vmem:[#allocation5 + $0x288] ss:$12 sps:$4 sm:$0xff]   ;;  %v2404_v23 = vld [vmem:[#allocation5 + $0x3c4] ss:$12 sps:$4 sm:$0xff]  }
  0x72   :  { %1125 = vmatprep.subr.bf16.mxu0 %v2266_v29  ;;  %2072 = vmatprep.subr.bf16.mxu1 %v2330_v50  ;;  %v2375_v29 = vld [vmem:[#allocation5 + $0x3e0] ss:$12 sps:$4 sm:$0xff]   ;;  %v2344_v50 = vld [vmem:[#allocation5 + $0x2a4] ss:$12 sps:$4 sm:$0xff]   ;;  %v2409_v25 = vld [vmem:[#allocation5 + $0x3dc] ss:$12 sps:$4 sm:$0xff]  }
  0x74   :  { %1310 = vmatmul.mubr.bf16.vlgmr.msra.gmra.mrb[0].mxu1 %v97_v54 }
  0x75   :  { %1126 = vmatpush1.bf16.msra.mxu0 %v2268_v32  ;;  %2073 = vmatpush3.bf16.msra.mxu1 %v2331_v53  ;;  %v2376_v32 = vld [vmem:[#allocation5 + $0x320] ss:$12 sps:$4 sm:$0xff]  }
  0x76   :  { %1127 = vmatprep.subr.bf16.mxu0 %v2269_v34  ;;  %2074 = vmatprep.subr.bf16.mxu1 %v2335_v55  ;;  %v2322_v34 = vld [vmem:[#allocation5 + $0x240] ss:$12 sps:$4 sm:$0xff]   ;;  %v2401_v55 = vld [vmem:[#allocation5 + $0x398] ss:$12 sps:$4 sm:$0xff]  }
  0x77   :  { %1350 = vmatprep.mubr.bf16.mxu1 %v100_v11  ;;  %v2342_v53 = vld [vmem:[#allocation5 + $0x2a0] ss:$12 sps:$4 sm:$0xff]  }
  0x79   :  { %1128 = vmatpush1.bf16.msra.mxu0 %v2271_v37  ;;  %2075 = vmatpush3.bf16.msra.mxu1 %v2336_v58  ;;  %v2385_v37 = vld [vmem:[#allocation5 + $0x410] ss:$12 sps:$4 sm:$0xff]   ;;  %v2354_v58 = vld [vmem:[#allocation5 + $0x2d4] ss:$12 sps:$4 sm:$0xff]  }
  0x7a   :  { %1129 = vmatprep.subr.bf16.mxu0 %v2272_v38  ;;  %2076 = vmatprep.subr.bf16.mxu1 %v2340_v59  ;;  %v2327_v38 = vld [vmem:[#allocation5 + $0x258] ss:$12 sps:$4 sm:$0xff]   ;;  %v2406_v59 = vld [vmem:[#allocation5 + $0x3b0] ss:$12 sps:$4 sm:$0xff]  }
  0x7d   :  { %1130 = vmatpush1.bf16.msra.mxu0 %v2274_v41  ;;  %2077 = vmatpush3.bf16.msra.mxu1 %v2341_v62  ;;  %v2390_v41 = vld [vmem:[#allocation5 + $0x428] ss:$12 sps:$4 sm:$0xff]   ;;  %v2352_v62 = vld [vmem:[#allocation5 + $0x2d0] ss:$12 sps:$4 sm:$0xff]  }
  0x7e   :  { %1131 = vmatprep.subr.bf16.mxu0 %v2275_v42  ;;  %2078 = vmatprep.subr.bf16.mxu1 %v2345_v63  ;;  %v2332_v42 = vld [vmem:[#allocation5 + $0x270] ss:$12 sps:$4 sm:$0xff]   ;;  %v2359_v63 = vld [vmem:[#allocation5 + $0x2ec] ss:$12 sps:$4 sm:$0xff]  }
  0x81   :  { %1132 = vmatpush1.bf16.msra.mxu0 %v2277_v45  ;;  %2079 = vmatpush3.bf16.msra.mxu1 %v2346_v2  ;;  %v88_v45 = vld [vmem:[#allocation2 + $0x28] sm:$0xff]  ;;  %v2357_v2 = vld [vmem:[#allocation5 + $0x2e8] ss:$12 sps:$4 sm:$0xff]  }
  0x82   :  { %1133 = vmatprep.subr.bf16.mxu0 %v2278_v46  ;;  %2080 = vmatprep.subr.bf16.mxu1 %v2350_v3  ;;  %v95_v46 = vld [vmem:[#allocation2 + $0x60] sm:$0xff] }
  0x83   :  { %v102_v48 = vpack.c.bf16 %v95_v46, %v88_v45  ;;  %v2364_v3 = vld [vmem:[#allocation5 + $0x304] ss:$12 sps:$4 sm:$0xff]   ;;  %v2436_v46 = vld [vmem:[#allocation7 + $0x50] sm:$0xff]  }
  0x84   :  { %v2435_v45 = vld [vmem:[#allocation7 + $0x8] sm:$0xff]  }
  0x85   :  { %1134 = vmatpush1.bf16.msra.mxu0 %v2280_v47  ;;  %2081 = vmatpush3.bf16.msra.mxu1 %v2351_v6  ;;  %v2395_v47 = vld [vmem:[#allocation5 + $0x440] ss:$12 sps:$4 sm:$0xff]   ;;  %v96_v6 = vld [vmem:[#allocation2 + $0x68] sm:$0xff] }
  0x86   :  { %1135 = vmatprep.subr.bf16.mxu0 %v2281_v52  ;;  %2082 = vmatprep.subr.bf16.mxu1 %v2355_v7  ;;  %v2400_v52 = vld [vmem:[#allocation5 + $0x458] ss:$12 sps:$4 sm:$0xff]   ;;  %v2362_v7 = vld [vmem:[#allocation5 + $0x300] ss:$12 sps:$4 sm:$0xff]  }
  0x89   :  { %1136 = vmatpush1.bf16.msra.mxu0 %v2283_v56  ;;  %2083 = vmatpush3.bf16.msra.mxu1 %v2356_v13  ;;  %v2347_v56 = vld [vmem:[#allocation5 + $0x2b8] ss:$12 sps:$4 sm:$0xff]  }
  0x8a   :  { %1148 = vmatprep.subr.bf16.mxu0 %v2286_v57  ;;  %2084 = vmatprep.subr.bf16.mxu1 %v2360_v14  ;;  %v2405_v57 = vld [vmem:[#allocation5 + $0x470] ss:$12 sps:$4 sm:$0xff]   ;;  %v2379_v13 = vld [vmem:[#allocation5 + $0x34c] ss:$12 sps:$4 sm:$0xff]   ;;  %v2377_v14 = vld [vmem:[#allocation5 + $0x348] ss:$12 sps:$4 sm:$0xff]  }
  0x8c   :  { %1138 = vmatmul.mubr.bf16.vlgmr.msra.gmra.mrb[0].mxu0 %v97_v54  ;;  %v2349_v54 = vld [vmem:[#allocation5 + $0x2bc] ss:$12 sps:$4 sm:$0xff]  }
  0x8d   :  { %1149 = vmatpush1.bf16.msra.mxu0 %v2284_v60  ;;  %1180 = vmatprep.mubr.bf16.mxu0 %v100_v11  ;;  %v87_v60 = vld [vmem:[#allocation2 + $0x20] sm:$0xff] }
  0x8e   :  { %1150 = vmatprep.subr.bf16.mxu0 %v2289_v61  ;;  %2085 = vmatpush3.bf16.msra.mxu1 %v2361_v17  ;;  %v94_v61 = vld [vmem:[#allocation2 + $0x58] sm:$0xff]  ;;  %v2374_v11 = vld [vmem:[#allocation5 + $0x334] ss:$12 sps:$4 sm:$0xff]  }
  0x8f   :  { %2086 = vmatprep.subr.bf16.mxu1 %v2365_v18  ;;  %v2389_v17 = vld [vmem:[#allocation5 + $0x37c] ss:$12 sps:$4 sm:$0xff]   ;;  %v2387_v18 = vld [vmem:[#allocation5 + $0x378] ss:$12 sps:$4 sm:$0xff]  }
  0x91   :  { %1151 = vmatpush1.bf16.msra.mxu0 %v2287_v0  ;;  %v2413_v0 = vld [vmem:[#allocation5 + $0x488] ss:$12 sps:$4 sm:$0xff]  }
  0x92   :  { %1152 = vmatprep.subr.bf16.mxu0 %v2294_v1  ;;  %2087 = vmatpush3.bf16.msra.mxu1 %v2366_v22  ;;  %v2689_v1 = vpack.c.bf16 %v94_v61, %v87_v60  ;;  %v2397_v22 = vld [vmem:[#allocation5 + $0x3a8] ss:$12 sps:$4 sm:$0xff]   ;;  %v302_v60 = vlaneseq }
  0x93   :  { %2094 = vmatprep.subr.bf16.mxu1 %v2370_v24  ;;  %v2402_v24 = vld [vmem:[#allocation5 + $0x3c0] ss:$12 sps:$4 sm:$0xff]  }
  0x94   :  { %v2444_v61 = vld [vmem:[#allocation7 + $0x70] sm:$0xff]  }
  0x95   :  { %1153 = vmatpush1.bf16.msra.mxu0 %v2292_v4  ;;  %1351 = vmatmul.mubr.bf16.vlgmr.msra.gmra.mrb[4].mxu1 %v2686_v28  ;;  %v2592_v4 = vmov 0.0  }
  0x96   :  { %1154 = vmatprep.subr.bf16.mxu0 %v2299_v5  ;;  %2095 = vmatpush3.bf16.msra.mxu1 %v2371_v27  ;;  %v89_v5 = vld [vmem:[#allocation2 + $0x30] sm:$0xff] }
  0x97   :  { %2096 = vmatprep.subr.bf16.mxu1 %v2375_v29  ;;  %1391 = vmatprep.mubr.bf16.mxu1 %v102_v48  ;;  %v2695_v9 = vpack.c.bf16 %v96_v6, %v89_v5  ;;  %v2412_v27 = vld [vmem:[#allocation5 + $0x3f4] ss:$12 sps:$4 sm:$0xff]   ;;  %v2416_v29 = vld [vmem:[#allocation5 + $0x40c] ss:$12 sps:$4 sm:$0xff]  }
  0x99   :  { %1155 = vmatpush1.bf16.msra.mxu0 %v2297_v10  ;;  %v2367_v10 = vld [vmem:[#allocation5 + $0x318] ss:$12 sps:$4 sm:$0xff]  }
  0x9a   :  { %1156 = vmatprep.subr.bf16.mxu0 %v2304_v12  ;;  %2097 = vmatpush3.bf16.msra.mxu1 %v2376_v32  ;;  %v2372_v12 = vld [vmem:[#allocation5 + $0x330] ss:$12 sps:$4 sm:$0xff]   ;;  %v2417_v32 = vld [vmem:[#allocation5 + $0x420] ss:$12 sps:$4 sm:$0xff]  }
  0x9b   :  { %2098 = vmatprep.subr.bf16.mxu1 %v2380_v33  ;;  %v2422_v33 = vld [vmem:[#allocation5 + $0x43c] ss:$12 sps:$4 sm:$0xff]  }
  0x9d   :  { %1157 = vmatpush1.bf16.msra.mxu0 %v2302_v15  ;;  %v2384_v15 = vld [vmem:[#allocation5 + $0x364] ss:$12 sps:$4 sm:$0xff]  }
  0x9e   :  { %1158 = vmatprep.subr.bf16.mxu0 %v2309_v16  ;;  %2099 = vmatpush3.bf16.msra.mxu1 %v2381_v36  ;;  %v2382_v16 = vld [vmem:[#allocation5 + $0x360] ss:$12 sps:$4 sm:$0xff]   ;;  %v2423_v36 = vld [vmem:[#allocation5 + $0x450] ss:$12 sps:$4 sm:$0xff]  }
  0x9f   :  { %2100 = vmatprep.subr.bf16.mxu1 %v2385_v37  ;;  %v2428_v37 = vld [vmem:[#allocation5 + $0x46c] ss:$12 sps:$4 sm:$0xff]  }
  0xa1   :  { %1159 = vmatpush1.bf16.msra.mxu0 %v2307_v19  ;;  %v2394_v19 = vld [vmem:[#allocation5 + $0x394] ss:$12 sps:$4 sm:$0xff]  }
  0xa2   :  { %1160 = vmatprep.subr.bf16.mxu0 %v2314_v20  ;;  %2101 = vmatpush3.bf16.msra.mxu1 %v2386_v40  ;;  %v2392_v20 = vld [vmem:[#allocation5 + $0x390] ss:$12 sps:$4 sm:$0xff]   ;;  %v2429_v40 = vld [vmem:[#allocation5 + $0x480] ss:$12 sps:$4 sm:$0xff]  }
  0xa3   :  { %2102 = vmatprep.subr.bf16.mxu1 %v2390_v41  ;;  %v2594_v41 = vmov 0  }
  0xa5   :  { %1161 = vmatpush1.bf16.msra.mxu0 %v2312_v21  ;;  %v2399_v21 = vld [vmem:[#allocation5 + $0x3ac] ss:$12 sps:$4 sm:$0xff]  }
  0xa6   :  { %1162 = vmatprep.subr.bf16.mxu0 %v2319_v26  ;;  %2103 = vmatpush3.bf16.msra.mxu1 %v2391_v44  ;;  %v2407_v26 = vld [vmem:[#allocation5 + $0x3d8] ss:$12 sps:$4 sm:$0xff]  }
  0xa7   :  { %2104 = vmatprep.subr.bf16.mxu1 %v2395_v47  ;;  %v2434_v44 = vld [vmem:[#allocation7 + $0x48] sm:$0xff]   ;;  %v2437_v47 = vld [vmem:[#allocation7 + $0x10] sm:$0xff]  }
  0xa9   :  { %1163 = vmatpush1.bf16.msra.mxu0 %v2317_v30  ;;  %v2414_v30 = vld [vmem:[#allocation5 + $0x408] ss:$12 sps:$4 sm:$0xff]  }
  0xaa   :  { %1164 = vmatprep.subr.bf16.mxu0 %v2324_v31  ;;  %2105 = vmatpush3.bf16.msra.mxu1 %v2396_v51  ;;  %v2419_v31 = vld [vmem:[#allocation5 + $0x424] ss:$12 sps:$4 sm:$0xff]   ;;  %v2441_v51 = vld [vmem:[#allocation7 + $0x20] sm:$0xff]  }
  0xab   :  { %2106 = vmatprep.subr.bf16.mxu1 %v2400_v52  ;;  %v2442_v52 = vld [vmem:[#allocation7 + $0x68] sm:$0xff]  }
  0xad   :  { %1165 = vmatpush1.bf16.msra.mxu0 %v2322_v34  ;;  %v2420_v34 = vld [vmem:[#allocation5 + $0x438] ss:$12 sps:$4 sm:$0xff]  }
  0xae   :  { %1166 = vmatprep.subr.bf16.mxu0 %v2329_v35  ;;  %2107 = vmatpush3.bf16.msra.mxu1 %v2401_v55  ;;  %v2425_v35 = vld [vmem:[#allocation5 + $0x454] ss:$12 sps:$4 sm:$0xff]  }
  0xaf   :  { %2108 = vmatprep.subr.bf16.mxu1 %v2405_v57 }
  0xb1   :  { %1167 = vmatpush1.bf16.msra.mxu0 %v2327_v38  ;;  %v2426_v38 = vld [vmem:[#allocation5 + $0x468] ss:$12 sps:$4 sm:$0xff]  }
  0xb2   :  { %1168 = vmatprep.subr.bf16.mxu0 %v2334_v39  ;;  %2109 = vmatpush3.bf16.msra.mxu1 %v2406_v59  ;;  %v2431_v39 = vld [vmem:[#allocation5 + $0x484] ss:$12 sps:$4 sm:$0xff]  }
  0xb3   :  { %2158 = vmatprep.subr.bf16.mxu1 %v2592_v4 }
  0xb5   :  { %1169 = vmatpush1.bf16.msra.mxu0 %v2332_v42  ;;  %1392 = vmatmul.mubr.bf16.vlgmr.msra.gmra.mrb[8].mxu1 %v2689_v1  ;;  %v2432_v42 = vld [vmem:[#allocation7 + $0x40] sm:$0xff]  }
  0xb6   :  { %1170 = vmatprep.subr.bf16.mxu0 %v2339_v43  ;;  %2159 = vmatpush3.bf16.msra.mxu1 %v2413_v0  ;;  %v2433_v43 = vld [vmem:[#allocation7] sm:$0xff]   ;;  %v2446_v0 = vld [vmem:[#allocation7 + $0x78] sm:$0xff]  }
  0xb7   :  { %2160 = vmatprep.mubr.msk.bf16.mxu1 %vm2593_vm1, %v2592_v4  ;;  %2118 = vmatprep.subr.bf16.mxu1 %v2432_v42 }
  0xb9   :  { %1171 = vmatpush1.bf16.msra.mxu0 %v2337_v49  ;;  %v2439_v49 = vld [vmem:[#allocation7 + $0x18] sm:$0xff]  }
  0xba   :  { %1172 = vmatprep.subr.bf16.mxu0 %v2344_v50  ;;  %v2440_v50 = vld [vmem:[#allocation7 + $0x60] sm:$0xff]  }
  0xbd   :  { %1173 = vmatpush1.bf16.msra.mxu0 %v2342_v53  ;;  %2161 = vmatmul.mubr.msk.bf16.vlgmr.msra.gmra.mrb[12].mxu1 %vm1101_vm0, %v2695_v9  ;;  %v2443_v53 = vld [vmem:[#allocation7 + $0x28] sm:$0xff]  }
  0xbe   :  { %1174 = vmatprep.subr.bf16.mxu0 %v2349_v54  ;;  %2119 = vmatpush3.bf16.msra.mxu1 %v2433_v43 }
  0xbf   :  { %2120 = vmatprep.subr.bf16.mxu1 %v2434_v44 }
  0xc1   :  { %1175 = vmatpush1.bf16.msra.mxu0 %v2347_v56 }
  0xc2   :  { %1176 = vmatprep.subr.bf16.mxu0 %v2354_v58  ;;  %2121 = vmatpush3.bf16.msra.mxu1 %v2435_v45 }
  0xc3   :  { %2122 = vmatprep.subr.bf16.mxu1 %v2436_v46 }
  0xc5   :  { %1177 = vmatpush1.bf16.msra.mxu0 %v2352_v62  ;;  %v2445_v62 = vld [vmem:[#allocation7 + $0x30] sm:$0xff]  }
  0xc6   :  { %1178 = vmatprep.subr.bf16.mxu0 %v2359_v63  ;;  %2123 = vmatpush3.bf16.msra.mxu1 %v2437_v47  ;;  %v303_v63 = vshrl.u32 %v302_v60, 7  ;;  %v2457_v60 = vld [vmem:[#allocation8 + $0x8] sm:$0xff]  }
  0xc9   :  { %1179 = vmatpush1.bf16.msra.mxu0 %v2357_v2  ;;  %v312_v2 = vsub.s32 2, %v303_v63 }
  0xca   :  { %1191 = vmatprep.subr.bf16.mxu0 %v2364_v3  ;;  %v300_v3 = vld [vmem:[%s2746_s2] sm:$0x7] }
  0xcb   :  { %v313_v5 = vrot.slane %v300_v3, %v312_v2  ;;  %v2463_v2 = vld [vmem:[#allocation8 + $0x38] sm:$0xff]  }
  0xcc   :  { %1181 = vmatmul.mubr.bf16.vlgmr.msra.gmra.mrb[0].mxu0 %v2686_v28  ;;  %v2410_v28 = vld [vmem:[#allocation5 + $0x3f0] ss:$12 sps:$4 sm:$0xff]  }
  0xcd   :  { %1192 = vmatpush1.bf16.msra.mxu0 %v2362_v7  ;;  %1223 = vmatprep.mubr.bf16.mxu0 %v102_v48  ;;  %v2438_v48 = vld [vmem:[#allocation7 + $0x58] sm:$0xff]  }
  0xce   :  { %1193 = vmatprep.subr.bf16.mxu0 %v2369_v8  ;;  %2124 = vmatprep.subr.bf16.mxu1 %v2438_v48 }
  0xcf   :  { %2125 = vmatpush3.bf16.msra.mxu1 %v2439_v49 }
  0xd0   :  { %2126 = vmatprep.subr.bf16.mxu1 %v2440_v50 }
  0xd1   :  { %1194 = vmatpush1.bf16.msra.mxu0 %v2367_v10 }
  0xd2   :  { %1195 = vmatprep.subr.bf16.mxu0 %v2374_v11 }
  0xd3   :  { %2127 = vmatpush3.bf16.msra.mxu1 %v2441_v51  ;;  %v2448_v51 = vld [vmem:[#allocation7 + $0x80] sm:$0xff]  }
  0xd4   :  { %2128 = vmatprep.subr.bf16.mxu1 %v2442_v52  ;;  %v2449_v52 = vld [vmem:[#allocation7 + $0x88] sm:$0xff]  }
  0xd5   :  { %1196 = vmatpush1.bf16.msra.mxu0 %v2372_v12 }
  0xd6   :  { %1197 = vmatprep.subr.bf16.mxu0 %v2379_v13 }
  0xd7   :  { %2129 = vmatpush3.bf16.msra.mxu1 %v2443_v53  ;;  %v2450_v53 = vld [vmem:[#allocation7 + $0x90] sm:$0xff]  }
  0xd8   :  { %2130 = vmatprep.subr.bf16.mxu1 %v2444_v61  ;;  %v2458_v61 = vld [vmem:[#allocation8 + $0x10] sm:$0xff]  }
  0xd9   :  { %1198 = vmatpush1.bf16.msra.mxu0 %v2377_v14 }
  0xda   :  { %1199 = vmatprep.subr.bf16.mxu0 %v2384_v15 }
  0xdb   :  { %2131 = vmatpush3.bf16.msra.mxu1 %v2445_v62  ;;  %v2459_v62 = vld [vmem:[#allocation8 + $0x18] sm:$0xff]  }
  0xdc   :  { %2132 = vmatprep.subr.bf16.mxu1 %v2446_v0  ;;  %v2461_v0 = vld [vmem:[#allocation8 + $0x28] sm:$0xff]  }
  0xdd   :  { %1200 = vmatpush1.bf16.msra.mxu0 %v2382_v16 }
  0xde   :  { %1201 = vmatprep.subr.bf16.mxu0 %v2389_v17 }
  0xe1   :  { %1202 = vmatpush1.bf16.msra.mxu0 %v2387_v18 }
  0xe2   :  { %1203 = vmatprep.subr.bf16.mxu0 %v2394_v19 }
  0xe5   :  { %1204 = vmatpush1.bf16.msra.mxu0 %v2392_v20 }
  0xe6   :  { %1205 = vmatprep.subr.bf16.mxu0 %v2399_v21 }
  0xe9   :  { %1206 = vmatpush1.bf16.msra.mxu0 %v2397_v22 }
  0xea   :  { %1207 = vmatprep.subr.bf16.mxu0 %v2404_v23 }
  0xed   :  { %1208 = vmatpush1.bf16.msra.mxu0 %v2402_v24 }
  0xee   :  { %1209 = vmatprep.subr.bf16.mxu0 %v2409_v25 }
  0xf1   :  { %1210 = vmatpush1.bf16.msra.mxu0 %v2407_v26 }
  0xf2   :  { %1211 = vmatprep.subr.bf16.mxu0 %v2412_v27 }
  0xf5   :  { %1212 = vmatpush1.bf16.msra.mxu0 %v2410_v28 }
  0xf6   :  { %1213 = vmatprep.subr.bf16.mxu0 %v2416_v29 }
  0xf9   :  { %1214 = vmatpush1.bf16.msra.mxu0 %v2414_v30 }
  0xfa   :  { %1215 = vmatprep.subr.bf16.mxu0 %v2419_v31 }
  0xfd   :  { %1216 = vmatpush1.bf16.msra.mxu0 %v2417_v32 }
  0xfe   :  { %1217 = vmatprep.subr.bf16.mxu0 %v2422_v33  ;;  %v304_v33 = vsub.s32 0, %v303_v63 }
 0x101   :  { %1218 = vmatpush1.bf16.msra.mxu0 %v2420_v34  ;;  %v308_v34 = vsub.s32 1, %v303_v63  ;;  %v2460_v63 = vld [vmem:[#allocation8 + $0x20] sm:$0xff]  }
 0x102   :  { %1219 = vmatprep.subr.bf16.mxu0 %v2425_v35  ;;  %v305_v35 = vrot.slane %v300_v3, %v304_v33 }
 0x105   :  { %1220 = vmatpush1.bf16.msra.mxu0 %v2423_v36  ;;  %v309_v36 = vrot.slane %v300_v3, %v308_v34 }
 0x106   :  { %1221 = vmatprep.subr.bf16.mxu0 %v2428_v37 }
 0x109   :  { %1222 = vmatpush1.bf16.msra.mxu0 %v2426_v38 }
 0x10a   :  { %1234 = vmatprep.subr.bf16.mxu0 %v2431_v39 }
 0x10c   :  { %1224 = vmatmul.mubr.bf16.vlgmr.msra.gmra.mrb[0].mxu0 %v2689_v1  ;;  %v2447_v1 = vld [vmem:[#allocation7 + $0x38] sm:$0xff]  }
 0x10d   :  { %1235 = vmatpush1.bf16.msra.mxu0 %v2429_v40  ;;  %1266 = vmatprep.mubr.bf16.mxu0 %v2594_v41 }
 0x10e   :  { %2133 = vmatpush3.bf16.msra.mxu1 %v2447_v1  ;;  %v2462_v1 = vld [vmem:[#allocation8 + $0x30] sm:$0xff]  }
 0x10f   :  { %2164 = vmatprep.subr.bf16.mxu1 %v2592_v4 }
 0x118   :  { %2014 = vmatmul.mubr.msk.bf16.vlgmr.msra.gmra.mrb[0].mxu0 %vm1101_vm0, %v2695_v9 }
 0x147   :  { %v2066_v54 = vpop.f32.mrb[0].mxu1 }
 0x148   :  { %v2067_v55 = vpop.f32.mrb[1].mxu1 }
 0x149   :  { %v2068_v56 = vadd.f32 %v2067_v55, %v2066_v54  ;;  %v2069_v57 = vpop.f32.mrb[2].mxu1  ;;  %v2451_v54 = vld [vmem:[#allocation7 + $0x98] sm:$0xff]   ;;  %v2452_v55 = vld [vmem:[#allocation7 + $0xa0] sm:$0xff]  }
 0x14a   :  { %v2070_v58 = vpop.f32.mrb[3].mxu1 }
 0x14b   :  { %v2071_v59 = vadd.f32 %v2070_v58, %v2069_v57  ;;  %v1312_v6 = vadd.f32 %v2068_v56, %v313_v5  ;;  %v2453_v56 = vld [vmem:[#allocation7 + $0xa8] sm:$0xff]   ;;  %v2454_v57 = vld [vmem:[#allocation7 + $0xb0] sm:$0xff]   ;;  %v2455_v58 = vld [vmem:[#allocation7 + $0xb8] sm:$0xff]  }
 0x14d   :  { %v1315_v9 = vadd.f32 %v2071_v59, %v313_v5  ;;  %v2456_v59 = vld [vmem:[#allocation8] sm:$0xff]  }
 0x168   :  { %v2088_v7 = vpop.f32.mrb[4].mxu1 }
 0x169   :  { %v2089_v8 = vpop.f32.mrb[5].mxu1 }
 0x16a   :  { %v2090_v10 = vadd.f32 %v2089_v8, %v2088_v7  ;;  %v2091_v11 = vpop.f32.mrb[6].mxu1 }
 0x16b   :  { %v2092_v12 = vpop.f32.mrb[7].mxu1 }
 0x16c   :  { %v1353_v13 = vadd.f32 %v2090_v10, %v1312_v6  ;;  %v2093_v14 = vadd.f32 %v2092_v12, %v2091_v11  ;;  %v2016_v10 = vld [vmem:[%s2748_s4] ss:$0 sm:$0xff]  ;;  %s2552_s4 = scalar_lea.vmem %s1854_s10, 256 }
 0x16d   :  { %p2553_p4 = scmp.ne.s32.totalorder %s1854_s10, %s2552_s4  ;;  %p2558_p6 = scmp.lt.s32.totalorder %s2552_s4, %s2552_s4 }
 0x16e   :  { %v1356_v15 = vadd.f32 %v2093_v14, %v1315_v9 }
 0x16f   :  { %p2559_p7 = por %p2558_p6, %p2557_p5 }
 0x171   :  { %p2560_p8 = pnand %p2559_p7, %p2553_p4 }
 0x188   :  { %v2110_v16 = vpop.f32.mrb[8].mxu1 }
 0x189   :  { %v2111_v17 = vpop.f32.mrb[9].mxu1 }
 0x18a   :  { %v2112_v18 = vadd.f32 %v2111_v17, %v2110_v16  ;;  %v2113_v19 = vpop.f32.mrb[10].mxu1 }
 0x18b   :  { %v2114_v20 = vpop.f32.mrb[11].mxu1 }
 0x18c   :  { %v2115_v21 = vadd.f32 %v2114_v20, %v2113_v19  ;;  %v1394_v22 = vadd.f32 %v2112_v18, %v1353_v13 }
 0x18e   :  { %v1397_v23 = vadd.f32 %v2115_v21, %v1356_v15  ;;  %v2041_v21 = vld [vmem:[%s2750_s6] ss:$0 sm:$0xff] }
 0x190   :  { %v1434_v24 = vpop.f32.mrb[12].mxu1 }
 0x191   :  { %v1435_v25 = vadd.f32 %v1434_v24, %v1394_v22  ;;  %v2162_v26 = vpop.f32.mrb[13].mxu1 }
 0x192   :  { %v1437_v27 = vpop.f32.mrb[14].mxu1 }
 0x193   :  { %v1443_v28 = vmax.f32 %v1435_v25, 0.0  ;;  %v1438_v29 = vadd.f32 %v1437_v27, %v1397_v23  ;;  %v2163_v30 = vpop.f32.mrb[15].mxu1 }
 0x195   :  { %v1446_v31 = vmax.f32 %v1438_v29, 0.0 }
 0x197   :  { %v1449_v32 = vpack.c.bf16 %v1446_v31, %v1443_v28 }
 0x1eb   :  { %v1268_v37 = vpop.f32.mrb[0].mxu0 }
 0x1ec   :  { %v2204_v38 = vadd.f32 %v1268_v37, %v305_v35  ;;  %v1270_v39 = vpop.f32.mrb[1].mxu0 }
 0x1ed   :  { %v2205_v40 = vadd.f32 %v1270_v39, %v309_v36  ;;  %v1272_v41 = vpop.f32.mrb[2].mxu0 }
 0x1ee   :  { %v2206_v42 = vadd.f32 %v1272_v41, %v305_v35  ;;  %v1274_v43 = vpop.f32.mrb[3].mxu0  ;;  %v1441_v45 = vmax.f32 %v2204_v38, 0.0 }
 0x1ef   :  { %v2207_v44 = vadd.f32 %v1274_v43, %v309_v36  ;;  %v1442_v47 = vmax.f32 %v2205_v40, 0.0 }
 0x1f0   :  { %v1444_v46 = vmax.f32 %v2206_v42, 0.0 }
 0x1f1   :  { %v1445_v48 = vmax.f32 %v2207_v44, 0.0 }
 0x1f2   :  { %v1447_v49 = vpack.c.bf16 %v1444_v46, %v1441_v45 }
 0x1f3   :  { %v1448_v50 = vpack.c.bf16 %v1445_v48, %v1442_v47 }
 0x1f5   :  { %1681 = vmatprep.mubr.bf16.mxu1 %v1448_v50 }
 0x1f6   :  { %1682 = vmatmul.mubr.bf16.vlgmr.msra.gmra.mrb[16].mxu1 %v1447_v49 }
 0x1f7   :  { %2165 = vmatpush3.bf16.msra.mxu1 %v2448_v51  ;;  %2180 = vmatprep.mubr.msk.bf16.mxu1 %vm2593_vm1, %v2592_v4 }
 0x1f8   :  { %2166 = vmatprep.subr.bf16.mxu1 %v2592_v4 }
 0x1fb   :  { %2167 = vmatpush3.bf16.msra.mxu1 %v2449_v52 }
 0x1fc   :  { %2168 = vmatprep.subr.bf16.mxu1 %v2592_v4 }
 0x1ff   :  { %2169 = vmatpush3.bf16.msra.mxu1 %v2450_v53 }
 0x200   :  { %2170 = vmatprep.subr.bf16.mxu1 %v2592_v4 }
 0x203   :  { %2171 = vmatpush3.bf16.msra.mxu1 %v2451_v54 }
 0x204   :  { %2172 = vmatprep.subr.bf16.mxu1 %v2592_v4 }
 0x207   :  { %2173 = vmatpush3.bf16.msra.mxu1 %v2452_v55 }
 0x208   :  { %2174 = vmatprep.subr.bf16.mxu1 %v2592_v4 }
 0x20b   :  { %2175 = vmatpush3.bf16.msra.mxu1 %v2453_v56 }
 0x20c   :  { %2176 = vmatprep.subr.bf16.mxu1 %v2592_v4 }
 0x20f   :  { %2177 = vmatpush3.bf16.msra.mxu1 %v2454_v57 }
 0x210   :  { %2178 = vmatprep.subr.bf16.mxu1 %v2592_v4 }
 0x213   :  { %2179 = vmatpush3.bf16.msra.mxu1 %v2455_v58 }
 0x214   :  { %2184 = vmatprep.subr.bf16.mxu1 %v2592_v4 }
 0x216   :  { %2181 = vmatmul.mubr.bf16.vlgmr.msra.gmra.mrb[20].mxu1 %v1449_v32 }
 0x217   :  { %2200 = vmatprep.mubr.msk.bf16.mxu1 %vm2593_vm1, %v2592_v4  ;;  %2185 = vmatpush3.bf16.msra.mxu1 %v2456_v59 }
 0x218   :  { %2186 = vmatprep.subr.bf16.mxu1 %v2592_v4 }
 0x21b   :  { %2187 = vmatpush3.bf16.msra.mxu1 %v2457_v60 }
 0x21c   :  { %2188 = vmatprep.subr.bf16.mxu1 %v2592_v4 }
 0x21f   :  { %2189 = vmatpush3.bf16.msra.mxu1 %v2458_v61 }
 0x220   :  { %2190 = vmatprep.subr.bf16.mxu1 %v2592_v4 }
 0x223   :  { %2191 = vmatpush3.bf16.msra.mxu1 %v2459_v62 }
 0x224   :  { %2192 = vmatprep.subr.bf16.mxu1 %v2592_v4 }
 0x227   :  { %2193 = vmatpush3.bf16.msra.mxu1 %v2460_v63 }
 0x228   :  { %2194 = vmatprep.subr.bf16.mxu1 %v2592_v4 }
 0x22b   :  { %2195 = vmatpush3.bf16.msra.mxu1 %v2461_v0 }
 0x22c   :  { %2196 = vmatprep.subr.bf16.mxu1 %v2592_v4 }
 0x22f   :  { %2197 = vmatpush3.bf16.msra.mxu1 %v2462_v1 }
 0x230   :  { %2198 = vmatprep.subr.bf16.mxu1 %v2592_v4 }
 0x233   :  { %2199 = vmatpush3.bf16.msra.mxu1 %v2463_v2 }
 0x2c9   :  { %v2134_v3 = vpop.f32.mrb[16].mxu1 }
 0x2ca   :  { %v2135_v5 = vpop.f32.mrb[17].mxu1 }
 0x2cb   :  { %v2136_v6 = vadd.f32 %v2135_v5, %v2134_v3  ;;  %v2137_v7 = vpop.f32.mrb[18].mxu1 }
 0x2cc   :  { %v2138_v8 = vpop.f32.mrb[19].mxu1 }
 0x2cd   :  { %v2139_v9 = vadd.f32 %v2138_v8, %v2137_v7  ;;  %v1684_v11 = vadd.f32 %v2136_v6, %v2016_v10 }
 0x2cf   :  { %v1687_v15 = vadd.f32 %v2139_v9, %v2016_v10 }
 0x2e9   :  { %v1724_v12 = vpop.f32.mrb[20].mxu1 }
 0x2ea   :  { %v1725_v13 = vadd.f32 %v1724_v12, %v1684_v11  ;;  %v2182_v14 = vpop.f32.mrb[21].mxu1 }
 0x2eb   :  { %v1727_v16 = vpop.f32.mrb[22].mxu1 }
 0x2ec   :  { %v1728_v17 = vadd.f32 %v1727_v16, %v1687_v15  ;;  %v2183_v4 = vpop.f32.mrb[23].mxu1  ;;  %v1731_v18 = vmax.f32 %v1725_v13, 0.0 }
 0x2ee   :  { %v1732_v19 = vmax.f32 %v1728_v17, 0.0 }
 0x2f0   :  { %v1733_v20 = vpack.c.bf16 %v1732_v19, %v1731_v18 }
 0x2f2   :  { %2201 = vmatmul.mubr.bf16.vlgmr.msra.gmra.mrb[24].mxu1 %v1733_v20 }
 0x3c5   :  { %v1839_v22 = vpop.f32.mrb[24].mxu1 }
 0x3c6   :  { %v1840_v23 = vadd.f32 %v2041_v21, %v1839_v22  ;;  %v2202_v24 = vpop.f32.mrb[25].mxu1 }
 0x3c7   :  { %v1842_v25 = vpop.f32.mrb[26].mxu1 }
 0x3c8   :  { %1846 = vst [vmem:[#allocation10] sm:$0xff] %v1840_v23  ;;  %v1843_v26 = vadd.f32 %v2041_v21, %v1842_v25  ;;  %v2203_v27 = vpop.f32.mrb[27].mxu1 }
 0x3ca   :  { %1847 = vst [vmem:[#allocation10 + $0x8] sm:$0xff] %v1843_v26 }
 0x3cb   :  { %2563 = shalt.err (!%p2560_p8)
}
 0x3cc   :  { %s2564_s12 = scalar_lea.hbm %s2751_s7, 256 }
 0x3cd   :  { %p2565_p9 = scmp.ne.s32.totalorder %s2751_s7, %s2564_s12  ;;  %p2568_p10 = scmp.lt.u32.totalorder %s2564_s12, %s2751_s7 }
 0x3cf   :  { %p2570_p11 = pnand %p2568_p10, %p2565_p9 }
 0x3d1   :  { %2573 = shalt.err (!%p2570_p11)
}
 0x3d2   :  { %s2596_s16 = smov 128   ;;  %s2597_s17 = smov 8  }
 0x3d3   :  { %1859 = dma.vmem_to_hbm [thread:$0]  %s1854_s10, 256, %s2751_s7, [#allocation4], %s2596_s16, %s2596_s16, %s2597_s17  }
 0x3d4   :  { %2580 = dma.done.wait [#allocation4], 256  }
 0x3d5   :  { %2581 = vsyncadd [#allocation4], 4294967040 }
 0x3d6   :  { %1863 = vsyncpa [#allocation3], 1 }
 0x3d7   :  { %1864 = vsyncpa [#allocation6], 1 }
 0x3d8   :  { %1865 = vsyncpa [#allocation9], 1 }
 0x3d9   :  { %1866 = vsyncpa [#allocation4], 1 }

</bundles_post_ra>
